<compile_context>
chip_gen: v7x
topology: tpu7x:2x2x1
jax: 0.10.0
libtpu: 0.0.40
codegen_flags: <defaults>
</compile_context>

<pallas_src>
import functools

import jax
import jax.numpy as jnp
from jax.experimental import pallas as pl
from jax.experimental.pallas import tpu as pltpu

EPS = 1e-5  # PyTorch nn.LayerNorm default eps


def _layernorm(x, g, b):
    mu = jnp.mean(x, axis=-1, keepdims=True)
    var = jnp.mean(jnp.square(x - mu), axis=-1, keepdims=True)
    return (x - mu) * jax.lax.rsqrt(var + EPS) * g + b


def _bf16(x):
    return x.astype(jnp.bfloat16)


def _pick_batch_block(batch, n, target_rows=512):
    """Largest divisor of `batch` with B_blk*N <= target_rows (MXU M-dim fill
    + weight-DMA amortization); keeps >1 batch blocks when batch allows."""
    best = 1
    for cand in range(1, batch + 1):
        if batch % cand == 0 and cand * n <= target_rows:
            best = cand
    return best


def _vmem_limit_bytes(b_blk, n, dim, inner, mlp, heads):
    """Scoped-VMEM budget from the chosen block shapes (double-buffered)."""
    f32, bf16 = 4, 2
    r = b_blk * n
    blk = (r * dim * f32 * 2                                 # x0 in + x out
           + b_blk * heads * n * n * bf16                    # attn out (bf16)
           + 4 * dim * f32                                    # LN gammas/betas
           + dim * 3 * inner * bf16 + inner * dim * bf16      # w_qkv, w_o
           + dim * mlp * bf16 + mlp * dim * bf16              # w_f1, w_f2
           + (2 * dim + mlp) * f32)                           # b_o, b_f2, b_f1
    scratch = r * inner * bf16
    est = 2 * blk + scratch + (4 << 20)                       # + headroom
    return int(min(64 << 20, max(32 << 20, est)))


# ---------------------------------------------------------------------------
# Stage 1: patch embedding kernel (LayerNorm -> Linear -> LayerNorm -> +pos).
# grid = (B // B_blk,). Hoisted out of the transformer depth loop.
# ---------------------------------------------------------------------------
def embed_kernel(patches_ref, pos_ref, ln_pre_g, ln_pre_b, w_pe, b_pe,
                 ln_post_g, ln_post_b, x0_ref, *, b_blk, n):
    p = patches_ref[...]                                      # (B_blk*N, patch_dim)
    h = _layernorm(p, ln_pre_g[...], ln_pre_b[...])
    h = jnp.dot(_bf16(h), w_pe[...],
                preferred_element_type=jnp.float32) + b_pe[...]
    h = _layernorm(h, ln_post_g[...], ln_post_b[...])
    pos = pos_ref[...]                                        # (N, dim)
    if b_blk > 1:                                             # static unroll
        pos = jnp.concatenate([pos] * b_blk, axis=0)          # (B_blk*N, dim)
    x0_ref[...] = h + pos


# ---------------------------------------------------------------------------
# Stage 2: fused transformer kernel. grid = (B//B_blk, depth); the token slab
# x (B_blk*N, dim) stays resident in the output VMEM block across all layers.
# ---------------------------------------------------------------------------
def layer_kernel(x0_ref,
                 ln_a_g, ln_a_b, w_qkv, w_o, b_o,
                 ln_f_g, ln_f_b, w_f1, b_f1, w_f2, b_f2,
                 x_ref, attn_ref, o_acc,
                 *, b_blk, n, heads, dim_head, scale):
    l = pl.program_id(1)
    inner = heads * dim_head
    rows = b_blk * n

    @pl.when(l == 0)
    def _init():
        x_ref[...] = x0_ref[...]

    x = x_ref[...]                                            # (rows, dim) f32, resident

    # ---- PreNorm attention branch ------------------------------------------
    h = _layernorm(x, ln_a_g[0], ln_a_b[0])
    qkv = jnp.dot(_bf16(h), w_qkv[0], preferred_element_type=jnp.float32)
    qkv = qkv.reshape(b_blk, n, 3 * inner)                    # leading-dim split only

    # TODO(synk): for production dim_head (e.g. 64), pad each head slab of
    # w_qkv / w_o to a 128-lane boundary so these slices become full-width.
    for hd in range(heads):                                   # static unrolled loop
        off = hd * dim_head
        q = _bf16(qkv[:, :, off:off + dim_head] * scale)      # scale folded into q
        k = _bf16(qkv[:, :, inner + off:inner + off + dim_head])
        v = _bf16(qkv[:, :, 2 * inner + off:2 * inner + off + dim_head])
        s = jnp.einsum('bnd,bmd->bnm', q, k,
                       preferred_element_type=jnp.float32)    # (B_blk, N, N)
        m = jnp.max(s, axis=-1, keepdims=True)
        e = jnp.exp(s - m)
        p_bf = _bf16(e / jnp.sum(e, axis=-1, keepdims=True))  # exact row-normalize
        # attn output block is depth-resident (index map ignores l), so these
        # stores are VMEM-only except for the final layer: HBM writeback
        # happens once per batch block and holds the LAST layer's attention.
        attn_ref[:, hd * n:(hd + 1) * n, :] = p_bf
        o_h = jnp.einsum('bnm,bmd->bnd', p_bf, v,
                         preferred_element_type=jnp.float32)
        o_acc[:, :, off:off + dim_head] = _bf16(o_h)          # per-head lane slab

    o_flat = o_acc[...].reshape(rows, inner)                  # bf16 MXU operand
    o = jnp.dot(o_flat, w_o[0], preferred_element_type=jnp.float32) + b_o[0]
    x = x + o                                                 # residual

    # ---- PreNorm feed-forward branch ----------------------------------------
    hf = _layernorm(x, ln_f_g[0], ln_f_b[0])
    hf = jnp.dot(_bf16(hf), w_f1[0], preferred_element_type=jnp.float32) + b_f1[0]
    # TODO(synk): PyTorch nn.GELU() is exact (erf); tanh approximation used for
    # guaranteed Mosaic lowering (~1e-3 relative difference).
    hf = jax.nn.gelu(hf, approximate=True)
    hf = jnp.dot(_bf16(hf), w_f2[0], preferred_element_type=jnp.float32) + b_f2[0]
    x_ref[...] = x + hf                                       # residual, stays resident


# ---------------------------------------------------------------------------
# Full forward (pool='mean' -> no cls token; dropout p=0 -> identity)
# ---------------------------------------------------------------------------
def vit_forward(video, params, *, patch_h, patch_w, heads, dim_head,
                batch_block=None):
    B, C, H, W = video.shape
    nh, nw = H // patch_h, W // patch_w
    N = nh * nw

    pe = params['patch_embed']
    lp = params['layers']                       # stacked along leading depth axis
    depth = lp['w_qkv'].shape[0]
    Pd, dim = pe['w_pe'].shape
    inner = heads * dim_head
    mlp = lp['w_f1'].shape[-1]

    b_blk = batch_block or _pick_batch_block(B, N)
    nb = B // b_blk
    rows_blk = b_blk * N

    # 'b c (h p1) (w p2) -> b (h w) (p1 p2 c)', tokens flattened to rows.
    xp = video.reshape(B, C, nh, patch_h, nw, patch_w)
    xp = xp.transpose(0, 2, 4, 3, 5, 1)                       # (B, nh, nw, p1, p2, C)
    patches = xp.reshape(B * N, patch_h * patch_w * C)

    # TODO(synk): PositionEmbeddingLearned2d source not provided; implemented as
    # the standard learned row/col embedding tables (dim//2 each) concatenated.
    col = params['col_embed'][:nw]                            # (nw, dim//2)
    row = params['row_embed'][:nh]                            # (nh, dim//2)
    half = col.shape[-1]
    pos = jnp.concatenate(
        [jnp.broadcast_to(col[None, :, :], (nh, nw, half)),
         jnp.broadcast_to(row[:, None, :], (nh, nw, half))],
        axis=-1).reshape(N, 2 * half)                         # (N, dim)

    inv2 = lambda b: (0, 0)

    # ---- stage 1: patch embedding -------------------------------------------
    x0 = pl.pallas_call(
        functools.partial(embed_kernel, b_blk=b_blk, n=N),
        out_shape=jax.ShapeDtypeStruct((B * N, dim), jnp.float32),
        grid=(nb,),
        in_specs=[
            pl.BlockSpec((rows_blk, Pd), lambda b: (b, 0)),   # patches
            pl.BlockSpec((N, dim), inv2),                     # pos
            pl.BlockSpec((1, Pd), inv2), pl.BlockSpec((1, Pd), inv2),   # ln_pre
            pl.BlockSpec((Pd, dim), inv2), pl.BlockSpec((1, dim), inv2),  # w_pe, b_pe
            pl.BlockSpec((1, dim), inv2), pl.BlockSpec((1, dim), inv2),   # ln_post
        ],
        out_specs=pl.BlockSpec((rows_blk, dim), lambda b: (b, 0)),
        compiler_params=pltpu.CompilerParams(
            dimension_semantics=("parallel",)),
    )(patches, pos,
      pe['ln_pre_g'], pe['ln_pre_b'], pe['w_pe'], pe['b_pe'],
      pe['ln_post_g'], pe['ln_post_b'])

    # ---- stage 2: fused transformer layers ----------------------------------
    kernel = functools.partial(layer_kernel, b_blk=b_blk, n=N, heads=heads,
                               dim_head=dim_head, scale=dim_head ** -0.5)
    per_layer = lambda b, l: (l, 0, 0)

    x_out, attn_flat = pl.pallas_call(
        kernel,
        out_shape=(jax.ShapeDtypeStruct((B * N, dim), jnp.float32),
                   jax.ShapeDtypeStruct((B, heads * N, N), jnp.bfloat16)),
        grid=(nb, depth),
        in_specs=[
            pl.BlockSpec((rows_blk, dim), lambda b, l: (b, 0)),     # x0 (embedded)
            pl.BlockSpec((1, 1, dim), per_layer),                   # ln_a_g
            pl.BlockSpec((1, 1, dim), per_layer),                   # ln_a_b
            pl.BlockSpec((1, dim, 3 * inner), per_layer),           # w_qkv
            pl.BlockSpec((1, inner, dim), per_layer),               # w_o
            pl.BlockSpec((1, 1, dim), per_layer),                   # b_o
            pl.BlockSpec((1, 1, dim), per_layer),                   # ln_f_g
            pl.BlockSpec((1, 1, dim), per_layer),                   # ln_f_b
            pl.BlockSpec((1, dim, mlp), per_layer),                 # w_f1
            pl.BlockSpec((1, 1, mlp), per_layer),                   # b_f1
            pl.BlockSpec((1, mlp, dim), per_layer),                 # w_f2
            pl.BlockSpec((1, 1, dim), per_layer),                   # b_f2
        ],
        out_specs=(pl.BlockSpec((rows_blk, dim), lambda b, l: (b, 0)),
                   pl.BlockSpec((b_blk, heads * N, N), lambda b, l: (b, 0, 0))),
        scratch_shapes=[pltpu.VMEM((b_blk, N, inner), jnp.bfloat16)],
        compiler_params=pltpu.CompilerParams(
            dimension_semantics=("parallel", "arbitrary"),
            vmem_limit_bytes=_vmem_limit_bytes(b_blk, N, dim, inner, mlp, heads)),
    )(x0,
      lp['ln_a_g'], lp['ln_a_b'], lp['w_qkv'], lp['w_o'], lp['b_o'],
      lp['ln_f_g'], lp['ln_f_b'], lp['w_f1'], lp['b_f1'], lp['w_f2'], lp['b_f2'])

    x = x_out.reshape(B, N, dim)
    attn = attn_flat.reshape(B, heads, N, N)                  # last layer's attn (bf16)
    pos_b = jnp.broadcast_to(pos[None], (B, N, dim))
    return x, pos_b, attn


# ---------------------------------------------------------------------------
# Deterministic synthetic parameters (shapes follow the module's __init__).
# Per-layer weights are stacked along a leading `depth` axis; MXU weight
# matrices are stored in bf16 (f32 accumulation inside the kernel).
# ---------------------------------------------------------------------------
def init_params(key, *, channels, patch_h, patch_w, dim, depth, heads,
                dim_head, mlp_dim, nh, nw):
    patch_dim = channels * patch_h * patch_w
    inner = heads * dim_head
    keys = jax.random.split(key, 7)

    def nrm(k, shape, scale):
        return jax.random.normal(k, shape, jnp.float32) * scale

    patch_embed_p = {
        'ln_pre_g': jnp.ones((1, patch_dim), jnp.float32),
        'ln_pre_b': jnp.zeros((1, patch_dim), jnp.float32),
        'w_pe': nrm(keys[0], (patch_dim, dim), (2.0 / dim) ** 0.5).astype(jnp.bfloat16),
        'b_pe': jnp.zeros((1, dim), jnp.float32),
        'ln_post_g': jnp.ones((1, dim), jnp.float32),
        'ln_post_b': jnp.zeros((1, dim), jnp.float32),
    }
    col_embed = nrm(keys[1], (nw, dim // 2), 1.0)
    row_embed = nrm(keys[2], (nh, dim // 2), 1.0)

    layers = {
        'ln_a_g': jnp.ones((depth, 1, dim), jnp.float32),
        'ln_a_b': jnp.zeros((depth, 1, dim), jnp.float32),
        'w_qkv': nrm(keys[3], (depth, dim, 3 * inner), dim ** -0.5).astype(jnp.bfloat16),
        'w_o': nrm(keys[4], (depth, inner, dim), inner ** -0.5).astype(jnp.bfloat16),
        'b_o': jnp.zeros((depth, 1, dim), jnp.float32),
        'ln_f_g': jnp.ones((depth, 1, dim), jnp.float32),
        'ln_f_b': jnp.zeros((depth, 1, dim), jnp.float32),
        'w_f1': nrm(keys[5], (depth, dim, mlp_dim), dim ** -0.5).astype(jnp.bfloat16),
        'b_f1': jnp.zeros((depth, 1, mlp_dim), jnp.float32),
        'w_f2': nrm(keys[6], (depth, mlp_dim, dim), mlp_dim ** -0.5).astype(jnp.bfloat16),
        'b_f2': jnp.zeros((depth, 1, dim), jnp.float32),
    }
    return {'patch_embed': patch_embed_p, 'col_embed': col_embed,
            'row_embed': row_embed, 'layers': layers}


if __name__ == "__main__":
    key = jax.random.PRNGKey(0)
    # image_size=16, image_patch_size=4, channels=1, dim=32, depth=2,
    # heads=4, dim_head=8, mlp_dim=64, pool='mean'
    B, C, H, W = 2, 1, 16, 16
    ph = pw = 4
    dim, depth, heads, dim_head, mlp_dim = 32, 2, 4, 8, 64

    kx, kp = jax.random.split(key)
    video = jax.random.normal(kx, (B, C, H, W), jnp.float32)
    params = init_params(kp, channels=C, patch_h=ph, patch_w=pw, dim=dim,
                         depth=depth, heads=heads, dim_head=dim_head,
                         mlp_dim=mlp_dim, nh=H // ph, nw=W // pw)

    x, pos, attn = vit_forward(video, params, patch_h=ph, patch_w=pw,
                               heads=heads, dim_head=dim_head)
    jax.block_until_ready((x, pos, attn))
    N = (H // ph) * (W // pw)
    assert x.shape == (B, N, dim)
    assert pos.shape == (B, N, dim)
    assert attn.shape == (B, heads, N, N)
    assert bool(jnp.all(jnp.isfinite(x)))
    print("KERNEL_OK")
</pallas_src>

<mosaic_0001>
module attributes {stable_mosaic.version = 11 : i64} {
  func.func @embed_kernel(%arg0: i32, %arg1: memref<32x16xf32, #tpu.memory_space<vmem>>, %arg2: memref<16x32xf32, #tpu.memory_space<vmem>>, %arg3: memref<1x16xf32, #tpu.memory_space<vmem>>, %arg4: memref<1x16xf32, #tpu.memory_space<vmem>>, %arg5: memref<16x32xbf16, #tpu.memory_space<vmem>>, %arg6: memref<1x32xf32, #tpu.memory_space<vmem>>, %arg7: memref<1x32xf32, #tpu.memory_space<vmem>>, %arg8: memref<1x32xf32, #tpu.memory_space<vmem>>, %arg9: memref<32x32xf32, #tpu.memory_space<vmem>>) attributes {dimension_semantics = [#tpu.dimension_semantics<parallel>], iteration_bounds = array<i64: 1>, scalar_prefetch = 0 : i64, scratch_operands = 0 : i64, tpu.core_type = #tpu.core_type<tc>, window_params = [{transform_indices = @transform_0, window_bounds = array<i64: 32, 16>}, {pipeline_mode = #tpu.pipeline_mode<synchronous>, transform_indices = @transform_1, window_bounds = array<i64: 16, 32>}, {pipeline_mode = #tpu.pipeline_mode<synchronous>, transform_indices = @transform_2, window_bounds = array<i64: 1, 16>}, {pipeline_mode = #tpu.pipeline_mode<synchronous>, transform_indices = @transform_3, window_bounds = array<i64: 1, 16>}, {pipeline_mode = #tpu.pipeline_mode<synchronous>, transform_indices = @transform_4, window_bounds = array<i64: 16, 32>}, {pipeline_mode = #tpu.pipeline_mode<synchronous>, transform_indices = @transform_5, window_bounds = array<i64: 1, 32>}, {pipeline_mode = #tpu.pipeline_mode<synchronous>, transform_indices = @transform_6, window_bounds = array<i64: 1, 32>}, {pipeline_mode = #tpu.pipeline_mode<synchronous>, transform_indices = @transform_7, window_bounds = array<i64: 1, 32>}, {transform_indices = @transform_8, window_bounds = array<i64: 32, 32>}]} {
    %c0 = arith.constant 0 : index
    %c0_0 = arith.constant 0 : index
    %0 = vector.load %arg1[%c0, %c0_0] : memref<32x16xf32, #tpu.memory_space<vmem>>, vector<32x16xf32>
    %c0_1 = arith.constant 0 : index
    %c0_2 = arith.constant 0 : index
    %1 = vector.load %arg3[%c0_1, %c0_2] : memref<1x16xf32, #tpu.memory_space<vmem>>, vector<1x16xf32>
    %c0_3 = arith.constant 0 : index
    %c0_4 = arith.constant 0 : index
    %2 = vector.load %arg4[%c0_3, %c0_4] : memref<1x16xf32, #tpu.memory_space<vmem>>, vector<1x16xf32>
    %cst = arith.constant dense<0.000000e+00> : vector<32xf32>
    %3 = vector.multi_reduction <add>, %0, %cst [1] : vector<32x16xf32> to vector<32xf32>
    %4 = vector.shape_cast %3 : vector<32xf32> to vector<32x1xf32>
    %cst_5 = arith.constant 1.600000e+01 : f32
    %5 = vector.broadcast %cst_5 : f32 to vector<32x1xf32>
    %6 = arith.divf %4, %5 : vector<32x1xf32>
    %7 = vector.broadcast %6 : vector<32x1xf32> to vector<32x16xf32>
    %8 = arith.subf %0, %7 : vector<32x16xf32>
    %9 = arith.mulf %8, %8 : vector<32x16xf32>
    %cst_6 = arith.constant dense<0.000000e+00> : vector<32xf32>
    %10 = vector.multi_reduction <add>, %9, %cst_6 [1] : vector<32x16xf32> to vector<32xf32>
    %11 = vector.shape_cast %10 : vector<32xf32> to vector<32x1xf32>
    %cst_7 = arith.constant 1.600000e+01 : f32
    %12 = vector.broadcast %cst_7 : f32 to vector<32x1xf32>
    %13 = arith.divf %11, %12 : vector<32x1xf32>
    %14 = vector.broadcast %6 : vector<32x1xf32> to vector<32x16xf32>
    %15 = arith.subf %0, %14 : vector<32x16xf32>
    %cst_8 = arith.constant 9.99999974E-6 : f32
    %16 = vector.broadcast %cst_8 : f32 to vector<32x1xf32>
    %17 = arith.addf %13, %16 : vector<32x1xf32>
    %18 = math.rsqrt %17 : vector<32x1xf32>
    %19 = vector.broadcast %18 : vector<32x1xf32> to vector<32x16xf32>
    %20 = arith.mulf %15, %19 : vector<32x16xf32>
    %21 = vector.broadcast %1 : vector<1x16xf32> to vector<32x16xf32>
    %22 = arith.mulf %20, %21 : vector<32x16xf32>
    %23 = vector.broadcast %2 : vector<1x16xf32> to vector<32x16xf32>
    %24 = arith.addf %22, %23 : vector<32x16xf32>
    %25 = arith.truncf %24 : vector<32x16xf32> to vector<32x16xbf16>
    %c0_9 = arith.constant 0 : index
    %c0_10 = arith.constant 0 : index
    %26 = vector.load %arg5[%c0_9, %c0_10] : memref<16x32xbf16, #tpu.memory_space<vmem>>, vector<16x32xbf16>
    %cst_11 = arith.constant dense<0.000000e+00> : vector<32x32xf32>
    %27 = tpu.matmul %25, %26, %cst_11 {dimension_numbers = #tpu.dot_dimension_numbers<[1], [0], [0], [1], [0, 0, 1, 1], [], []>} : vector<32x16xbf16>, vector<16x32xbf16>, vector<32x32xf32> -> vector<32x32xf32>
    %c0_12 = arith.constant 0 : index
    %c0_13 = arith.constant 0 : index
    %28 = vector.load %arg6[%c0_12, %c0_13] : memref<1x32xf32, #tpu.memory_space<vmem>>, vector<1x32xf32>
    %29 = vector.broadcast %28 : vector<1x32xf32> to vector<32x32xf32>
    %30 = arith.addf %27, %29 : vector<32x32xf32>
    %c0_14 = arith.constant 0 : index
    %c0_15 = arith.constant 0 : index
    %31 = vector.load %arg7[%c0_14, %c0_15] : memref<1x32xf32, #tpu.memory_space<vmem>>, vector<1x32xf32>
    %c0_16 = arith.constant 0 : index
    %c0_17 = arith.constant 0 : index
    %32 = vector.load %arg8[%c0_16, %c0_17] : memref<1x32xf32, #tpu.memory_space<vmem>>, vector<1x32xf32>
    %cst_18 = arith.constant dense<0.000000e+00> : vector<32xf32>
    %33 = vector.multi_reduction <add>, %30, %cst_18 [1] : vector<32x32xf32> to vector<32xf32>
    %34 = vector.shape_cast %33 : vector<32xf32> to vector<32x1xf32>
    %cst_19 = arith.constant 3.200000e+01 : f32
    %35 = vector.broadcast %cst_19 : f32 to vector<32x1xf32>
    %36 = arith.divf %34, %35 : vector<32x1xf32>
    %37 = vector.broadcast %36 : vector<32x1xf32> to vector<32x32xf32>
    %38 = arith.subf %30, %37 : vector<32x32xf32>
    %39 = arith.mulf %38, %38 : vector<32x32xf32>
    %cst_20 = arith.constant dense<0.000000e+00> : vector<32xf32>
    %40 = vector.multi_reduction <add>, %39, %cst_20 [1] : vector<32x32xf32> to vector<32xf32>
    %41 = vector.shape_cast %40 : vector<32xf32> to vector<32x1xf32>
    %cst_21 = arith.constant 3.200000e+01 : f32
    %42 = vector.broadcast %cst_21 : f32 to vector<32x1xf32>
    %43 = arith.divf %41, %42 : vector<32x1xf32>
    %44 = vector.broadcast %36 : vector<32x1xf32> to vector<32x32xf32>
    %45 = arith.subf %30, %44 : vector<32x32xf32>
    %cst_22 = arith.constant 9.99999974E-6 : f32
    %46 = vector.broadcast %cst_22 : f32 to vector<32x1xf32>
    %47 = arith.addf %43, %46 : vector<32x1xf32>
    %48 = math.rsqrt %47 : vector<32x1xf32>
    %49 = vector.broadcast %48 : vector<32x1xf32> to vector<32x32xf32>
    %50 = arith.mulf %45, %49 : vector<32x32xf32>
    %51 = vector.broadcast %31 : vector<1x32xf32> to vector<32x32xf32>
    %52 = arith.mulf %50, %51 : vector<32x32xf32>
    %53 = vector.broadcast %32 : vector<1x32xf32> to vector<32x32xf32>
    %54 = arith.addf %52, %53 : vector<32x32xf32>
    %c0_23 = arith.constant 0 : index
    %c0_24 = arith.constant 0 : index
    %55 = vector.load %arg2[%c0_23, %c0_24] : memref<16x32xf32, #tpu.memory_space<vmem>>, vector<16x32xf32>
    %56 = tpu.concatenate %55, %55 in 0 : vector<16x32xf32>, vector<16x32xf32> -> vector<32x32xf32>
    %57 = arith.addf %54, %56 : vector<32x32xf32>
    %c0_25 = arith.constant 0 : index
    %c0_26 = arith.constant 0 : index
    %58 = vector.load %arg9[%c0_25, %c0_26] : memref<32x32xf32, #tpu.memory_space<vmem>>, vector<32x32xf32>
    tpu.vector_store %arg9[%c0_25, %c0_26], %57 {strides = array<i32>} : memref<32x32xf32, #tpu.memory_space<vmem>>, vector<32x32xf32>,
    return
  }
  func.func @transform_0(%arg0: i32) -> (i32, i32) {
    %c0_i32 = arith.constant 0 : i32
    %c0_i32_0 = arith.constant 0 : i32
    return %arg0, %c0_i32 : i32, i32
  }
  func.func @transform_1(%arg0: i32) -> (i32, i32) {
    %c0_i32 = arith.constant 0 : i32
    %c0_i32_0 = arith.constant 0 : i32
    %c0_i32_1 = arith.constant 0 : i32
    return %c0_i32, %c0_i32_0 : i32, i32
  }
  func.func @transform_2(%arg0: i32) -> (i32, i32) {
    %c0_i32 = arith.constant 0 : i32
    %c0_i32_0 = arith.constant 0 : i32
    %c0_i32_1 = arith.constant 0 : i32
    return %c0_i32, %c0_i32_0 : i32, i32
  }
  func.func @transform_3(%arg0: i32) -> (i32, i32) {
    %c0_i32 = arith.constant 0 : i32
    %c0_i32_0 = arith.constant 0 : i32
    %c0_i32_1 = arith.constant 0 : i32
    return %c0_i32, %c0_i32_0 : i32, i32
  }
  func.func @transform_4(%arg0: i32) -> (i32, i32) {
    %c0_i32 = arith.constant 0 : i32
    %c0_i32_0 = arith.constant 0 : i32
    %c0_i32_1 = arith.constant 0 : i32
    return %c0_i32, %c0_i32_0 : i32, i32
  }
  func.func @transform_5(%arg0: i32) -> (i32, i32) {
    %c0_i32 = arith.constant 0 : i32
    %c0_i32_0 = arith.constant 0 : i32
    %c0_i32_1 = arith.constant 0 : i32
    return %c0_i32, %c0_i32_0 : i32, i32
  }
  func.func @transform_6(%arg0: i32) -> (i32, i32) {
    %c0_i32 = arith.constant 0 : i32
    %c0_i32_0 = arith.constant 0 : i32
    %c0_i32_1 = arith.constant 0 : i32
    return %c0_i32, %c0_i32_0 : i32, i32
  }
  func.func @transform_7(%arg0: i32) -> (i32, i32) {
    %c0_i32 = arith.constant 0 : i32
    %c0_i32_0 = arith.constant 0 : i32
    %c0_i32_1 = arith.constant 0 : i32
    return %c0_i32, %c0_i32_0 : i32, i32
  }
  func.func @transform_8(%arg0: i32) -> (i32, i32) {
    %c0_i32 = arith.constant 0 : i32
    %c0_i32_0 = arith.constant 0 : i32
    return %arg0, %c0_i32 : i32, i32
  }
}

</mosaic_0001>

<bundles_post_ra>
// kernel: tpu_custom_call.1
= control target key start
LH: loop header
LB: loop body
LE: loop exit
PB: predicated region body
PF: predicated region fallthrough
CT: control target
= control target key end

     0   :  { %vm37_vm0 = vcmask 130048   ;;  %s464_s0 = inlined_call_operand.vmem [shape: f32[32,16], index: 0, kind: input, shape index: {}]   ;;  %s465_s1 = inlined_call_operand.vmem [shape: f32[16,32], index: 1, kind: input, shape index: {}]   ;;  %s466_s2 = inlined_call_operand.vmem [shape: f32[1,16], index: 2, kind: input, shape index: {}]   ;;  %s467_s3 = inlined_call_operand.vmem [shape: f32[1,16], index: 3, kind: input, shape index: {}]   ;;  %s468_s4 = inlined_call_operand.vmem [shape: bf16[16,32], index: 4, kind: input, shape index: {}]   ;;  %s469_s5 = inlined_call_operand.vmem [shape: f32[1,32], index: 5, kind: input, shape index: {}]   ;;  %s470_s6 = inlined_call_operand.vmem [shape: f32[1,32], index: 6, kind: input, shape index: {}]   ;;  %s471_s7 = inlined_call_operand.vmem [shape: f32[1,32], index: 7, kind: input, shape index: {}]   ;;  %s472_s8 = inlined_call_operand.hbm [shape: f32[32,32], index: 8, kind: output, shape index: {}]  }
   0x1   :  { %v31_v0 = vld [vmem:[%s464_s0] sm:$0xff]  ;;  %v33_v1 = vld [vmem:[%s464_s0 + $0x10] sm:$0xff]  ;;  %v32_v2 = vld [vmem:[%s464_s0 + $0x8] sm:$0xff] }
   0x2   :  { %v38_v3 = vsel %vm37_vm0, %v31_v0, 0.0  ;;  %v44_v4 = vsel %vm37_vm0, %v33_v1, 0.0  ;;  %v34_v5 = vld [vmem:[%s464_s0 + $0x18] sm:$0xff] }
   0x3   :  { %39 = vadd.xlane.f32.xlu0 %v38_v3  ;;  %45 = vadd.xlane.f32.xlu1 %v44_v4 }
   0x4   :  { %13 = vsyncpa [#allocation3], 0  ;;  %v41_v6 = vsel %vm37_vm0, %v32_v2, 0.0  ;;  %v47_v7 = vsel %vm37_vm0, %v34_v5, 0.0  ;;  %v305_v28 = vld [vmem:[%s468_s4] sm:$0xff]   ;;  %vm185_vm1 = vcmask 261120  }
   0x5   :  { %296 = vmatprep.subr.bf16.mxu0 %v305_v28  ;;  %v285_v43 = vld [vmem:[%s466_s2] ss:$0 sm:$0xff] }
   0x6   :  { %297 = vmatpush3.bf16.msra.mxu0 %v305_v28  ;;  %v286_v49 = vld [vmem:[%s467_s3] ss:$0 sm:$0xff] }
   0x7   :  { %42 = vadd.xlane.f32.xlu0 %v41_v6  ;;  %48 = vadd.xlane.f32.xlu1 %v47_v7  ;;  %v287_v61 = vld [vmem:[%s469_s5] ss:$0 sm:$0xff] }
  0x90   :  { %v40_v8 = vpop.xlane.xlu0 %39  ;;  %v46_v9 = vpop.xlane.xlu1 %45 }
  0x91   :  { %v51_v10 = vmul.f32 0.0625, %v40_v8  ;;  %v53_v11 = vmul.f32 0.0625, %v46_v9 }
  0x93   :  { %v55_v12 = vsub.f32 %v31_v0, %v51_v10  ;;  %v57_v13 = vsub.f32 %v33_v1, %v53_v11 }
  0x94   :  { %v43_v14 = vpop.xlane.xlu0 %42  ;;  %v49_v15 = vpop.xlane.xlu1 %48 }
  0x95   :  { %v52_v16 = vmul.f32 0.0625, %v43_v14  ;;  %v54_v17 = vmul.f32 0.0625, %v49_v15  ;;  %v59_v18 = vmul.f32 %v55_v12, %v55_v12  ;;  %v61_v19 = vmul.f32 %v57_v13, %v57_v13 }
  0x97   :  { %v56_v20 = vsub.f32 %v32_v2, %v52_v16  ;;  %v58_v21 = vsub.f32 %v34_v5, %v54_v17  ;;  %v63_v22 = vsel %vm37_vm0, %v59_v18, 0.0  ;;  %v69_v23 = vsel %vm37_vm0, %v61_v19, 0.0 }
  0x98   :  { %64 = vadd.xlane.f32.xlu0 %v63_v22 }
  0x99   :  { %v60_v24 = vmul.f32 %v56_v20, %v56_v20  ;;  %v62_v25 = vmul.f32 %v58_v21, %v58_v21 }
  0x9b   :  { %v66_v26 = vsel %vm37_vm0, %v60_v24, 0.0  ;;  %v72_v27 = vsel %vm37_vm0, %v62_v25, 0.0 }
  0x9c   :  { %70 = vadd.xlane.f32.xlu0 %v69_v23  ;;  %67 = vadd.xlane.f32.xlu1 %v66_v26 }
  0xa0   :  { %73 = vadd.xlane.f32.xlu1 %v72_v27 }
 0x125   :  { %v65_v29 = vpop.xlane.xlu0 %64 }
 0x126   :  { %v75_v30 = vmul.f32 0.0625, %v65_v29 }
 0x128   :  { %v79_v31 = vadd.f32 1e-05, %v75_v30 }
 0x129   :  { %v68_v32 = vpop.xlane.xlu1 %67  ;;  %v71_v33 = vpop.xlane.xlu0 %70 }
 0x12a   :  { %306 = vrsqrt.f32 %v79_v31  ;;  %v76_v34 = vmul.f32 0.0625, %v68_v32  ;;  %v77_v35 = vmul.f32 0.0625, %v71_v33 }
 0x12c   :  { %v80_v36 = vadd.f32 1e-05, %v76_v34  ;;  %v81_v37 = vadd.f32 1e-05, %v77_v35 }
 0x12d   :  { %v74_v38 = vpop.xlane.xlu1 %73 }
 0x12e   :  { %308 = vrsqrt.f32 %v80_v36  ;;  %v78_v39 = vmul.f32 0.0625, %v74_v38 }
 0x12f   :  { %310 = vrsqrt.f32 %v81_v37 }
 0x130   :  { %v82_v40 = vadd.f32 1e-05, %v78_v39 }
 0x132   :  { %312 = vrsqrt.f32 %v82_v40 }
 0x134   :  { %v307_v41 = vpop.eup %306 }
 0x135   :  { %v87_v42 = vmul.f32 %v307_v41, %v55_v12 }
 0x137   :  { %v97_v47 = vmul.f32 %v285_v43, %v87_v42 }
 0x138   :  { %v309_v44 = vpop.eup %308 }
 0x139   :  { %v311_v45 = vpop.eup %310  ;;  %v88_v46 = vmul.f32 %v309_v44, %v56_v20  ;;  %v107_v53 = vadd.f32 %v286_v49, %v97_v47 }
 0x13a   :  { %v89_v48 = vmul.f32 %v311_v45, %v57_v13 }
 0x13b   :  { %v98_v50 = vmul.f32 %v285_v43, %v88_v46  ;;  %v292_v46 = vld [vmem:[%s471_s7] ss:$0 sm:$0xff] }
 0x13c   :  { %v313_v51 = vpop.eup %312  ;;  %v99_v55 = vmul.f32 %v285_v43, %v89_v48 }
 0x13d   :  { %v90_v52 = vmul.f32 %v313_v51, %v58_v21  ;;  %v108_v54 = vadd.f32 %v286_v49, %v98_v50  ;;  %v259_v50 = vld [vmem:[%s465_s1] sm:$0xff] }
 0x13e   :  { %v109_v58 = vadd.f32 %v286_v49, %v99_v55  ;;  %v260_v55 = vld [vmem:[%s465_s1 + $0x8] sm:$0xff] }
 0x13f   :  { %v111_v56 = vpack.c.bf16 %v108_v54, %v107_v53  ;;  %v100_v57 = vmul.f32 %v285_v43, %v90_v52  ;;  %v291_v43 = vld [vmem:[%s470_s6] ss:$0 sm:$0xff]  ;;  %s346_s6 = smov [#allocation2]  }
 0x140   :  { %s274_s7 = sshll.u32 %s346_s6, 4  ;;  %s275_s7 = int_to_ptr.vmem [resolvable:$true] %s274_s7 }
 0x141   :  { %298 = vmatprep.mubr.msk.bf16.mxu0 %vm37_vm0, %v111_v56  ;;  %v110_v59 = vadd.f32 %v286_v49, %v100_v57  ;;  %s322_s1 = scalar_lea.vmem %s275_s7, 512  ;;  %p327_p1 = scmp.lt.s32.totalorder %s275_s7, %s275_s7 }
 0x142   :  { %p323_p0 = scmp.ne.s32.totalorder %s275_s7, %s322_s1  ;;  %p328_p2 = scmp.lt.s32.totalorder %s322_s1, %s322_s1 }
 0x143   :  { %v112_v60 = vpack.c.bf16 %v110_v59, %v109_v58 }
 0x144   :  { %p329_p3 = por %p328_p2, %p327_p1 }
 0x145   :  { %299 = vmatmul.mubr.msk.bf16.vlgmr.msra.gmra.mrb[0].mxu0 %vm37_vm0, %v112_v60 }
 0x146   :  { %p330_p4 = pnand %p329_p3, %p323_p0 }
 0x218   :  { %v300_v62 = vpop.f32.mrb[0].mxu0 }
 0x219   :  { %v168_v63 = vpop.f32.mrb[1].mxu0  ;;  %v177_v3 = vadd.f32 %v300_v62, %v287_v61 }
 0x21a   :  { %v169_v0 = vadd.f32 %v287_v61, %v168_v63  ;;  %v301_v1 = vpop.f32.mrb[2].mxu0 }
 0x21b   :  { %v171_v2 = vpop.f32.mrb[3].mxu0  ;;  %v180_v6 = vadd.f32 %v301_v1, %v287_v61  ;;  %v192_v8 = vsel %vm185_vm1, %v177_v3, 0.0 }
 0x21c   :  { %v172_v4 = vadd.f32 %v287_v61, %v171_v2  ;;  %v186_v5 = vsel %vm185_vm1, %v169_v0, 0.0 }
 0x21d   :  { %187 = vadd.xlane.f32.xlu0 %v186_v5  ;;  %v195_v9 = vsel %vm185_vm1, %v180_v6, 0.0 }
 0x21e   :  { %v189_v7 = vsel %vm185_vm1, %v172_v4, 0.0 }
 0x21f   :  { %190 = vadd.xlane.f32.xlu1 %v189_v7 }
 0x221   :  { %193 = vadd.xlane.f32.xlu0 %v192_v8 }
 0x223   :  { %196 = vadd.xlane.f32.xlu1 %v195_v9 }
 0x2aa   :  { %v188_v10 = vpop.xlane.xlu0 %187 }
 0x2ab   :  { %v199_v11 = vmul.f32 0.03125, %v188_v10 }
 0x2ac   :  { %v191_v12 = vpop.xlane.xlu1 %190 }
 0x2ad   :  { %v203_v13 = vsub.f32 %v169_v0, %v199_v11  ;;  %v200_v14 = vmul.f32 0.03125, %v191_v12 }
 0x2ae   :  { %v194_v15 = vpop.xlane.xlu0 %193 }
 0x2af   :  { %v204_v16 = vsub.f32 %v172_v4, %v200_v14  ;;  %v201_v17 = vmul.f32 0.03125, %v194_v15  ;;  %v207_v18 = vmul.f32 %v203_v13, %v203_v13 }
 0x2b0   :  { %v197_v19 = vpop.xlane.xlu1 %196 }
 0x2b1   :  { %v205_v20 = vsub.f32 %v177_v3, %v201_v17  ;;  %v202_v21 = vmul.f32 0.03125, %v197_v19  ;;  %v211_v22 = vsel %vm185_vm1, %v207_v18, 0.0  ;;  %v208_v23 = vmul.f32 %v204_v16, %v204_v16 }
 0x2b2   :  { %212 = vadd.xlane.f32.xlu0 %v211_v22 }
 0x2b3   :  { %v206_v24 = vsub.f32 %v180_v6, %v202_v21  ;;  %v214_v25 = vsel %vm185_vm1, %v208_v23, 0.0  ;;  %v209_v26 = vmul.f32 %v205_v20, %v205_v20 }
 0x2b4   :  { %215 = vadd.xlane.f32.xlu1 %v214_v25 }
 0x2b5   :  { %v217_v27 = vsel %vm185_vm1, %v209_v26, 0.0  ;;  %v210_v28 = vmul.f32 %v206_v24, %v206_v24 }
 0x2b6   :  { %218 = vadd.xlane.f32.xlu0 %v217_v27 }
 0x2b7   :  { %v220_v29 = vsel %vm185_vm1, %v210_v28, 0.0 }
 0x2b8   :  { %221 = vadd.xlane.f32.xlu1 %v220_v29 }
 0x33f   :  { %v213_v30 = vpop.xlane.xlu0 %212 }
 0x340   :  { %v223_v31 = vmul.f32 0.03125, %v213_v30 }
 0x341   :  { %v216_v32 = vpop.xlane.xlu1 %215 }
 0x342   :  { %v227_v33 = vadd.f32 1e-05, %v223_v31  ;;  %v224_v34 = vmul.f32 0.03125, %v216_v32 }
 0x343   :  { %v219_v35 = vpop.xlane.xlu0 %218 }
 0x344   :  { %314 = vrsqrt.f32 %v227_v33  ;;  %v228_v36 = vadd.f32 1e-05, %v224_v34  ;;  %v225_v37 = vmul.f32 0.03125, %v219_v35 }
 0x345   :  { %v222_v38 = vpop.xlane.xlu1 %221 }
 0x346   :  { %316 = vrsqrt.f32 %v228_v36  ;;  %v229_v39 = vadd.f32 1e-05, %v225_v37  ;;  %v226_v40 = vmul.f32 0.03125, %v222_v38 }
 0x348   :  { %318 = vrsqrt.f32 %v229_v39  ;;  %v230_v41 = vadd.f32 1e-05, %v226_v40 }
 0x34a   :  { %320 = vrsqrt.f32 %v230_v41 }
 0x34e   :  { %v315_v42 = vpop.eup %314 }
 0x34f   :  { %v235_v44 = vmul.f32 %v315_v42, %v203_v13 }
 0x350   :  { %v317_v45 = vpop.eup %316 }
 0x351   :  { %v245_v47 = vmul.f32 %v291_v43, %v235_v44  ;;  %v236_v48 = vmul.f32 %v317_v45, %v204_v16 }
 0x352   :  { %v319_v49 = vpop.eup %318 }
 0x353   :  { %v255_v51 = vadd.f32 %v292_v46, %v245_v47  ;;  %v246_v52 = vmul.f32 %v291_v43, %v236_v48  ;;  %v237_v53 = vmul.f32 %v319_v49, %v205_v20 }
 0x354   :  { %v321_v54 = vpop.eup %320 }
 0x355   :  { %v256_v56 = vadd.f32 %v292_v46, %v246_v52  ;;  %v247_v57 = vmul.f32 %v291_v43, %v237_v53  ;;  %v238_v58 = vmul.f32 %v321_v54, %v206_v24  ;;  %v261_v59 = vadd.f32 %v259_v50, %v255_v51 }
 0x357   :  { %v257_v60 = vadd.f32 %v292_v46, %v247_v57  ;;  %v248_v61 = vmul.f32 %v291_v43, %v238_v58  ;;  %v262_v62 = vadd.f32 %v260_v55, %v256_v56  ;;  %265 = vst.msk [vmem:[#allocation2] sm:$0xff] %vm185_vm1, %v261_v59 }
 0x359   :  { %v258_v63 = vadd.f32 %v292_v46, %v248_v61  ;;  %v263_v0 = vadd.f32 %v259_v50, %v257_v60  ;;  %266 = vst.msk [vmem:[#allocation2 + $0x8] sm:$0xff] %vm185_vm1, %v262_v62 }
 0x35b   :  { %v264_v1 = vadd.f32 %v260_v55, %v258_v63  ;;  %267 = vst.msk [vmem:[#allocation2 + $0x10] sm:$0xff] %vm185_vm1, %v263_v0 }
 0x35d   :  { %268 = vst.msk [vmem:[#allocation2 + $0x18] sm:$0xff] %vm185_vm1, %v264_v1 }
 0x35e   :  { %333 = shalt.err (!%p330_p4)
}
 0x35f   :  { %s334_s26 = scalar_lea.hbm %s472_s8, 512 }
 0x360   :  { %p335_p5 = scmp.ne.s32.totalorder %s472_s8, %s334_s26  ;;  %p338_p6 = scmp.lt.u32.totalorder %s334_s26, %s472_s8 }
 0x362   :  { %p340_p7 = pnand %p338_p6, %p335_p5 }
 0x364   :  { %343 = shalt.err (!%p340_p7)
}
 0x365   :  { %s347_s9 = smov 128   ;;  %s348_s10 = smov 8  }
 0x366   :  { %280 = dma.vmem_to_hbm [thread:$0]  %s275_s7, 512, %s472_s8, [#allocation3], %s347_s9, %s347_s9, %s348_s10  }
 0x367   :  { %344 = dma.done.wait [#allocation3], 512  }
 0x368   :  { %345 = vsyncadd [#allocation3], 4294966784 }
 0x369   :  { %284 = vsyncpa [#allocation3], 1 }

</bundles_post_ra>
